<compile_context>
chip_gen: v7x
topology: tpu7x:2x2x1
jax: 0.10.0
libtpu: 0.0.40
codegen_flags: <defaults>
</compile_context>

<pallas_src>
import jax
import jax.numpy as jnp
from jax.experimental import pallas as pl
from jax.experimental.pallas import tpu as pltpu


# ----------------------------- helpers ---------------------------------------

def _round_up(x, m):
    return ((x + m - 1) // m) * m


def _vmem_capacity_bytes():
    # 128 MiB on v5e/v6e, 64 MiB per TensorCore on v7x.
    try:
        return int(pltpu.get_tpu_info().vmem_capacity_bytes)
    except Exception:
        return 64 * 1024 * 1024   # conservative fallback (v7x per-TC VMEM)


def _choose_vocab_tile(E, V, *, batch_hint, vocab_tile_cap, vmem_capacity):
    """Largest multiple-of-128 vocab tile whose double-buffered Wu tile +
    double-buffered f32 output tile (+ resident y) fit a conservative VMEM budget."""
    budget = int(vmem_capacity * 0.6)            # headroom for compiler scratch
    e_sub = _round_up(E, 8)
    b_sub = _round_up(max(batch_hint, 8), 8)
    per_128_lanes = (2 * e_sub * 128 * 2         # Wu tile, 2 buffers, bf16
                     + 2 * b_sub * 128 * 4)      # out tile, 2 buffers, f32
    fixed = b_sub * _round_up(E, 128) * 2        # y, single buffer, bf16
    max_cols = max(1, (budget - fixed) // per_128_lanes)
    tn = min(max_cols * 128,
             max(128, (vocab_tile_cap // 128) * 128),
             _round_up(V, 128))
    return max(int(tn), 128)


def prepare_params(params, *, vocab_tile=2048, batch_hint=128):
    """One-time (offline) weight preparation.  Keeps per-forward HBM traffic minimal:
    bf16 weights, pre-transposed for NN matmuls, unembed padded + transposed so the
    streaming kernel reads lane-dense (E, tn) tiles and writes lane-dense logits."""
    emb = params["embedding"]    # (V, E)  nn.Embedding.weight (kept f32)
    w1  = params["linear1_w"]    # (H, E)  nn.Linear(E, H).weight
    w2  = params["linear2_w"]    # (E, H)  nn.Linear(H, E).weight
    wu  = params["unembed_w"]    # (V, E)  nn.Linear(E, V).weight
    V, E = wu.shape

    tn = _choose_vocab_tile(E, V, batch_hint=batch_hint, vocab_tile_cap=vocab_tile,
                            vmem_capacity=_vmem_capacity_bytes())
    V_pad = _round_up(V, tn)
    wu_pad = jnp.pad(wu.astype(jnp.bfloat16), ((0, V_pad - V), (0, 0)))  # zero rows
    return {
        "embedding": emb,                          # (V, E) f32
        "w1_t": jnp.asarray(w1.T, jnp.bfloat16),   # (E, H)
        "w2_t": jnp.asarray(w2.T, jnp.bfloat16),   # (H, E)
        "wu_t": jnp.asarray(wu_pad.T),             # (E, V_pad) bf16, zero-padded cols
        "vocab_size": int(V),
        "vocab_tile": int(tn),
    }


# ----------------------------- kernels ----------------------------------------

def _frontend_kernel(e1_ref, e2_ref, w1t_ref, w2t_ref, y_ref):
    # Folded shared linear1: (e1 + e2) @ W1^T (exact algebra: linear1r is linear1).
    e_sum = (e1_ref[...].astype(jnp.float32)
             + e2_ref[...].astype(jnp.float32)).astype(jnp.bfloat16)
    h = jnp.dot(e_sum, w1t_ref[...], preferred_element_type=jnp.float32)   # (B, H)
    h = h * jax.nn.sigmoid(h)                                              # SiLU, f32
    y = jnp.dot(h.astype(jnp.bfloat16), w2t_ref[...],
                preferred_element_type=jnp.float32)                        # (B, E)
    y_ref[...] = y.astype(y_ref.dtype)


def _unembed_kernel(y_ref, wut_ref, out_ref):
    # One lane-dense (B, tn) logit tile per grid step: y @ Wu_tile (NN contraction,
    # no transpose — Wu is stored pre-transposed as (E, V_pad)).
    out_ref[...] = jnp.dot(y_ref[...], wut_ref[...],
                           preferred_element_type=jnp.float32)


# ----------------------------- forward -----------------------------------------

def mlp_unchunked_forward(x1, x2, prepared):
    """x1, x2: (B,) int32 token ids.  `prepared` from prepare_params().
    Returns (B, vocab_size) float32 logits."""
    emb  = prepared["embedding"]
    w1_t = prepared["w1_t"]
    w2_t = prepared["w2_t"]
    wu_t = prepared["wu_t"]
    V    = prepared["vocab_size"]
    tn   = prepared["vocab_tile"]

    # Embedding gather stays in plain JAX; only (B, E) bytes per call.
    # TODO(synk): for large B*E fuse the gather into the front-end kernel with
    # PrefetchScalarGridSpec(num_scalar_prefetch=2) + pl.Element row index_maps.
    e1 = jnp.take(emb, x1, axis=0).astype(jnp.bfloat16)   # (B, E)
    e2 = jnp.take(emb, x2, axis=0).astype(jnp.bfloat16)   # (B, E)

    B, E = e1.shape
    H = w1_t.shape[1]
    V_pad = wu_t.shape[1]
    grid = (V_pad // tn,)

    vmem_cap = _vmem_capacity_bytes()
    b_sub, e_sub, h_sub = _round_up(B, 8), _round_up(E, 8), _round_up(H, 8)
    e_lane, h_lane = _round_up(E, 128), _round_up(H, 128)

    # --- tiny front-end: y = SiLU((e1+e2) @ W1^T) @ W2^T, whole arrays in VMEM ---
    # TODO(synk): tile the front-end over H if the E*H bf16 weights outgrow VMEM.
    fe_bytes = (2 * b_sub * e_lane * 2       # e1, e2 (bf16)
                + e_sub * h_lane * 2         # w1_t
                + h_sub * e_lane * 2         # w2_t
                + b_sub * e_lane * 2         # y out (bf16)
                + b_sub * h_lane * 4)        # h intermediate (f32)
    y = pl.pallas_call(
        _frontend_kernel,
        out_shape=jax.ShapeDtypeStruct((B, E), jnp.bfloat16),
        compiler_params=pltpu.CompilerParams(
            vmem_limit_bytes=int(min(vmem_cap, 2 * fe_bytes + (4 << 20)))),
        cost_estimate=pl.CostEstimate(
            flops=4 * B * E * H,
            transcendentals=B * H,
            bytes_accessed=2 * B * E * 2 + 2 * E * H * 2 + B * E * 2),
    )(e1, e2, w1_t, w2_t)

    # --- streaming unembed: logits[:, j*tn:(j+1)*tn] = y @ Wu_t[:, tile] ---
    ue_bytes = (2 * e_sub * tn * 2           # Wu tile, double-buffered (bf16)
                + 2 * b_sub * tn * 4         # out tile, double-buffered (f32)
                + b_sub * e_lane * 2)        # y, single buffer (bf16)
    out = pl.pallas_call(
        _unembed_kernel,
        out_shape=jax.ShapeDtypeStruct((B, V_pad), jnp.float32),
        grid_spec=pltpu.PrefetchScalarGridSpec(
            num_scalar_prefetch=0,
            grid=grid,
            in_specs=[
                # y: constant index -> fetched once per core, single buffer.
                pl.BlockSpec((B, E), lambda j: (0, 0),
                             pipeline_mode=pl.Buffered(1)),
                # Wu tile: streamed lane-dense, auto double-buffered.
                pl.BlockSpec((E, tn), lambda j: (0, j)),
            ],
            out_specs=pl.BlockSpec((B, tn), lambda j: (0, j)),
        ),
        compiler_params=pltpu.CompilerParams(
            # Vocab tiles are fully independent -> megacore / both TCs on v7x.
            dimension_semantics=("parallel",),
            vmem_limit_bytes=int(min(vmem_cap, 2 * ue_bytes + (4 << 20)))),
        cost_estimate=pl.CostEstimate(
            flops=2 * B * E * V_pad,
            transcendentals=0,
            bytes_accessed=E * V_pad * 2 + B * V_pad * 4 + B * E * 2),
    )(y, wu_t)

    return out if V_pad == V else out[:, :V]


# ----------------------------- reference & tests --------------------------------

def _reference_forward(x1, x2, params):
    """Pure-JAX f32 reference matching the PyTorch module exactly."""
    emb, w1, w2, wu = (params["embedding"], params["linear1_w"],
                       params["linear2_w"], params["unembed_w"])
    e1 = jnp.take(emb, x1, axis=0)
    e2 = jnp.take(emb, x2, axis=0)
    h = e1 @ w1.T + e2 @ w1.T
    h = h * jax.nn.sigmoid(h)
    return (h @ w2.T) @ wu.T


if __name__ == "__main__":
    def run_case(vocab_size, embed_dim, hidden_dim, batch, seed, vocab_tile, tol=0.05):
        key = jax.random.PRNGKey(seed)
        k_emb, k_w1, k_w2, k_wu, k_x1, k_x2 = jax.random.split(key, 6)
        params = {
            "embedding": jax.random.normal(k_emb, (vocab_size, embed_dim), jnp.float32),
            "linear1_w": jax.random.normal(k_w1, (hidden_dim, embed_dim), jnp.float32) * 0.1,
            "linear2_w": jax.random.normal(k_w2, (embed_dim, hidden_dim), jnp.float32) * 0.1,
            "unembed_w": jax.random.normal(k_wu, (vocab_size, embed_dim), jnp.float32) * 0.1,
        }
        x1 = jax.random.randint(k_x1, (batch,), 0, vocab_size, dtype=jnp.int32)
        x2 = jax.random.randint(k_x2, (batch,), 0, vocab_size, dtype=jnp.int32)

        # One-time weight prep (bf16 cast / transpose / vocab padding) — NOT per call.
        prepared = prepare_params(params, vocab_tile=vocab_tile, batch_hint=batch)

        out = jax.block_until_ready(mlp_unchunked_forward(x1, x2, prepared))
        ref = jax.block_until_ready(_reference_forward(x1, x2, params))
        assert out.shape == (batch, vocab_size), out.shape
        # bf16 MXU inputs with f32 accumulation: compare scale-relative.
        scale = float(jnp.max(jnp.abs(ref))) + 1e-6
        err = float(jnp.max(jnp.abs(out - ref))) / scale
        assert err < tol, f"scale-relative error {err:.4f} >= {tol}"

    # Toy shapes consistent with the module (V < 128 -> padded single tile).
    run_case(vocab_size=16, embed_dim=8, hidden_dim=32, batch=8,
             seed=0, vocab_tile=512)
    # Lane-dense multi-tile path (grid = 2), V a multiple of 128.
    run_case(vocab_size=256, embed_dim=128, hidden_dim=128, batch=8,
             seed=1, vocab_tile=128)
    # V not a multiple of 128 -> vocab padded to a tile multiple, logits sliced back.
    run_case(vocab_size=200, embed_dim=128, hidden_dim=64, batch=16,
             seed=2, vocab_tile=128)

    print("KERNEL_OK")
</pallas_src>

<mosaic_0001>
module attributes {stable_mosaic.version = 11 : i64} {
  func.func @_frontend_kernel(%arg0: memref<8x8xbf16, #tpu.memory_space<vmem>>, %arg1: memref<8x8xbf16, #tpu.memory_space<vmem>>, %arg2: memref<8x32xbf16, #tpu.memory_space<vmem>>, %arg3: memref<32x8xbf16, #tpu.memory_space<vmem>>, %arg4: memref<8x8xbf16, #tpu.memory_space<vmem>>) attributes {dimension_semantics = [], scalar_prefetch = 0 : i64, scratch_operands = 0 : i64, tpu.core_type = #tpu.core_type<tc>} {
    %c0 = arith.constant 0 : index
    %c0_0 = arith.constant 0 : index
    %0 = vector.load %arg0[%c0, %c0_0] : memref<8x8xbf16, #tpu.memory_space<vmem>>, vector<8x8xbf16>
    %1 = arith.extf %0 : vector<8x8xbf16> to vector<8x8xf32>
    %c0_1 = arith.constant 0 : index
    %c0_2 = arith.constant 0 : index
    %2 = vector.load %arg1[%c0_1, %c0_2] : memref<8x8xbf16, #tpu.memory_space<vmem>>, vector<8x8xbf16>
    %3 = arith.extf %2 : vector<8x8xbf16> to vector<8x8xf32>
    %4 = arith.addf %1, %3 : vector<8x8xf32>
    %5 = arith.truncf %4 : vector<8x8xf32> to vector<8x8xbf16>
    %c0_3 = arith.constant 0 : index
    %c0_4 = arith.constant 0 : index
    %6 = vector.load %arg2[%c0_3, %c0_4] : memref<8x32xbf16, #tpu.memory_space<vmem>>, vector<8x32xbf16>
    %cst = arith.constant dense<0.000000e+00> : vector<8x32xf32>
    %7 = tpu.matmul %5, %6, %cst {dimension_numbers = #tpu.dot_dimension_numbers<[1], [0], [0], [1], [0, 0, 1, 1], [], []>} : vector<8x8xbf16>, vector<8x32xbf16>, vector<8x32xf32> -> vector<8x32xf32>
    %8 = arith.negf %7 : vector<8x32xf32>
    %9 = math.exp %8 : vector<8x32xf32>
    %cst_5 = arith.constant 1.000000e+00 : f32
    %10 = vector.broadcast %cst_5 : f32 to vector<8x32xf32>
    %11 = arith.addf %10, %9 : vector<8x32xf32>
    %12 = arith.divf %10, %11 : vector<8x32xf32>
    %13 = arith.mulf %7, %12 : vector<8x32xf32>
    %14 = arith.truncf %13 : vector<8x32xf32> to vector<8x32xbf16>
    %c0_6 = arith.constant 0 : index
    %c0_7 = arith.constant 0 : index
    %15 = vector.load %arg3[%c0_6, %c0_7] : memref<32x8xbf16, #tpu.memory_space<vmem>>, vector<32x8xbf16>
    %cst_8 = arith.constant dense<0.000000e+00> : vector<8x8xf32>
    %16 = tpu.matmul %14, %15, %cst_8 {dimension_numbers = #tpu.dot_dimension_numbers<[1], [0], [0], [1], [0, 0, 1, 1], [], []>} : vector<8x32xbf16>, vector<32x8xbf16>, vector<8x8xf32> -> vector<8x8xf32>
    %17 = arith.truncf %16 : vector<8x8xf32> to vector<8x8xbf16>
    %c0_9 = arith.constant 0 : index
    %c0_10 = arith.constant 0 : index
    %18 = vector.load %arg4[%c0_9, %c0_10] : memref<8x8xbf16, #tpu.memory_space<vmem>>, vector<8x8xbf16>
    tpu.vector_store %arg4[%c0_9, %c0_10], %17 {strides = array<i32>} : memref<8x8xbf16, #tpu.memory_space<vmem>>, vector<8x8xbf16>,
    return
  }
}

</mosaic_0001>

<bundles_post_ra>
// kernel: tpu_custom_call.1
= control target key start
LH: loop header
LB: loop body
LE: loop exit
PB: predicated region body
PF: predicated region fallthrough
CT: control target
= control target key end

     0   :  { %vm30_vm0 = vcmask 1043456   ;;  %v216_v1 = vmov 0.0   ;;  %vm217_vm1 = vmmov 0   ;;  %s271_s0 = inlined_call_operand.vmem [shape: bf16[8,8], index: 0, kind: input, shape index: {}]   ;;  %s272_s1 = inlined_call_operand.vmem [shape: bf16[8,8], index: 1, kind: input, shape index: {}]   ;;  %s273_s2 = inlined_call_operand.vmem [shape: bf16[8,32], index: 2, kind: input, shape index: {}]   ;;  %s274_s3 = inlined_call_operand.vmem [shape: bf16[32,8], index: 3, kind: input, shape index: {}]   ;;  %s275_s4 = inlined_call_operand.hbm [shape: bf16[8,8], index: 4, kind: output, shape index: {}]  }
   0x1   :  { %v25_v0 = vld [vmem:[%s273_s2] sm:$0xf]  ;;  %169 = vmatprep.subr.bf16.mxu0 %v216_v1  ;;  %171 = vmatprep.mubr.msk.bf16.mxu0 %vm217_vm1, %v216_v1 }
   0x2   :  { %v32_v2 = vsel %vm30_vm0, %v25_v0, 0  ;;  %v19_v3 = vld [vmem:[%s271_s0] sm:$0xf]  ;;  %175 = vmatprep.subr.bf16.mxu1 %v216_v1  ;;  %179 = vmatprep.mubr.msk.bf16.mxu1 %vm217_vm1, %v216_v1 }
   0x3   :  { %v21_v4 = vld [vmem:[%s272_s1] sm:$0xf]  ;;  %170 = vmatpush3.bf16.msra.mxu0 %v32_v2  ;;  %v20_v5 = vunpack.c.l.bf16 %v19_v3 }
   0x4   :  { %v22_v6 = vunpack.c.l.bf16 %v21_v4 }
   0x5   :  { %9 = vsyncpa [#allocation3], 0  ;;  %vm26_vm2 = vcmask 64512   ;;  %v186_v9 = vld [vmem:[%s274_s3] sm:$0xff]   ;;  %v187_v10 = vld [vmem:[%s274_s3 + $0x8] sm:$0xff]   ;;  %vm98_vm3 = vcmask 261120  }
   0x6   :  { %v23_v7 = vadd.f32 %v22_v6, %v20_v5  ;;  %176 = vmatpush3.bf16.msra.mxu1 %v186_v9  ;;  %s218_s1 = smov [#allocation2]   ;;  %vm143_vm4 = vcmask 60416  }
   0x7   :  { %177 = vmatprep.subr.bf16.mxu1 %v216_v1  ;;  %s151_s23 = sshll.u32 %s218_s1, 4  ;;  %s152_s23 = int_to_ptr.vmem [resolvable:$true] %s151_s23 }
   0x8   :  { %v24_v8 = vpack.c.bf16 %v23_v7, %v23_v7  ;;  %s192_s3 = scalar_lea.vmem %s152_s23, 64  ;;  %p197_p1 = scmp.lt.s32.totalorder %s152_s23, %s152_s23 }
   0x9   :  { %p193_p0 = scmp.ne.s32.totalorder %s152_s23, %s192_s3  ;;  %p198_p2 = scmp.lt.s32.totalorder %s192_s3, %s192_s3 }
   0xa   :  { %172 = vmatmul.mubr.msk.bf16.vlgmr.msra.gmra.mrb[0].mxu0 %vm26_vm2, %v24_v8  ;;  %178 = vmatpush3.bf16.msra.mxu1 %v187_v10 }
   0xb   :  { %p199_p3 = por %p198_p2, %p197_p1 }
   0xd   :  { %p200_p4 = pnand %p199_p3, %p193_p0 }
  0xdd   :  { %v68_v11 = vpop.f32.mrb[0].mxu0 }
  0xde   :  { %v160_v12 = vmul.f32 -1.442695, %v68_v11  ;;  %v173_v13 = vpop.f32.mrb[1].mxu0 }
  0xdf   :  { %v71_v14 = vpop.f32.mrb[2].mxu0 }
  0xe0   :  { %188 = vpow2.f32 %v160_v12  ;;  %v174_v15 = vpop.f32.mrb[3].mxu0 }
  0xea   :  { %v189_v16 = vpop.eup %188 }
  0xeb   :  { %v77_v17 = vadd.f32 1.0, %v189_v16 }
  0xed   :  { %190 = vrcp.f32 %v77_v17 }
  0xf7   :  { %v191_v18 = vpop.eup %190 }
  0xf8   :  { %v80_v19 = vmul.f32 %v191_v18, %v68_v11 }
  0xfa   :  { %v81_v20 = vpack.c.bf16 %v80_v19, %v80_v19 }
  0xfc   :  { %180 = vmatmul.mubr.msk.bf16.vlgmr.msra.gmra.mrb[0].mxu1 %vm98_vm3, %v81_v20 }
 0x1cf   :  { %v136_v21 = vpop.f32.mrb[0].mxu1 }
 0x1d0   :  { %v142_v22 = vpack.c.bf16 %v136_v21, %v136_v21  ;;  %v181_v23 = vpop.f32.mrb[1].mxu1 }
 0x1d1   :  { %v139_v24 = vpop.f32.mrb[2].mxu1 }
 0x1d2   :  { %v182_v25 = vpop.f32.mrb[3].mxu1  ;;  %144 = vst.msk [vmem:[#allocation2] sm:$0xf] %vm143_vm4, %v142_v22 }
 0x1d3   :  { %203 = shalt.err (!%p200_p4)
}
 0x1d4   :  { %s204_s26 = scalar_lea.hbm %s275_s4, 64 }
 0x1d5   :  { %p205_p5 = scmp.ne.s32.totalorder %s275_s4, %s204_s26  ;;  %p208_p6 = scmp.lt.u32.totalorder %s204_s26, %s275_s4 }
 0x1d7   :  { %p210_p7 = pnand %p208_p6, %p205_p5 }
 0x1d9   :  { %213 = shalt.err (!%p210_p7)
}
 0x1da   :  { %154 = dma.vmem_to_hbm [thread:$0]  %s152_s23, 64, %s275_s4, [#allocation3]  }
 0x1db   :  { %214 = dma.done.wait [#allocation3], 64  }
 0x1dc   :  { %215 = vsyncadd [#allocation3], 4294967232 }
 0x1dd   :  { %158 = vsyncpa [#allocation3], 1 }

</bundles_post_ra>
